<compile_context>
chip_gen: v6e
topology: v6e:2x2x1
jax: 0.10.0
libtpu: 0.0.40
codegen_flags: <defaults>
</compile_context>

<pallas_src>
import functools

import jax
import jax.numpy as jnp
from jax import lax
from jax.experimental import pallas as pl
from jax.experimental.pallas import tpu as pltpu


def _round_up(x, m):
    return ((x + m - 1) // m) * m


def _cdiv(a, b):
    return -(-a // b)


def _vmem_capacity_bytes():
    try:
        cap = int(pltpu.get_tpu_info().vmem_capacity_bytes)
        if cap >= 16 * 1024 * 1024:
            return cap
    except Exception:
        pass
    return 128 * 1024 * 1024  # v5e / v6e default


# ---------------------------------------------------------------------------
# Pallas kernel: fused (patches @ W + b) -> PixelNorm(channel) -> activation
# ---------------------------------------------------------------------------
def _block_kernel(x_ref, w_ref, b_ref, o_ref, acc_ref, *, nkt, inv_cout, eps,
                  neg_slope, final):
    # x_ref : (tm, tk)     bf16 patch-rows tile
    # w_ref : (tk, Coutp)  bf16 weight slab (channels on lanes)
    # b_ref : (1, Coutp)   f32 bias (zero in padded channels)
    # o_ref : (tm, Coutp)  bf16 output tile (lane-dense stores)
    # acc_ref: (tm, Coutp) f32 accumulator scratch (used only when nkt > 1)

    def _finish(acc):
        acc = acc + b_ref[...]
        # PixelNorm over the *true* channel count: padded channels are exact zeros
        # (zero weights + zero bias), so the sum of squares is unaffected.
        ms = jnp.sum(acc * acc, axis=-1, keepdims=True) * inv_cout
        y = acc * lax.rsqrt(ms + eps)            # rsqrt -> EUP slot
        if final:
            y = jnp.tanh(y)                      # Tanh path (final=True)
        else:
            y = jnp.maximum(y, neg_slope * y)    # LeakyReLU(0.2), single VPU max
        o_ref[...] = y.astype(o_ref.dtype)

    if nkt == 1:
        _finish(jnp.dot(x_ref[...], w_ref[...], preferred_element_type=jnp.float32))
    else:
        kk = pl.program_id(1)

        @pl.when(kk == 0)
        def _():
            acc_ref[...] = jnp.zeros_like(acc_ref)

        acc_ref[...] += jnp.dot(x_ref[...], w_ref[...],
                                preferred_element_type=jnp.float32)

        @pl.when(kk == nkt - 1)
        def _():
            _finish(acc_ref[...])


# ---------------------------------------------------------------------------
# Layout glue: im2col directly in (n, ho, wo, kh, kw, cin) column order (bf16)
# ---------------------------------------------------------------------------
def _im2col_nhwc(x_nchw, k, stride, padding, dtype):
    """Returns (N*Ho*Wo, k*k*Cin) in `dtype`, columns ordered (kh, kw, cin)."""
    N, C, H, W = x_nchw.shape
    Ho = (H + 2 * padding - k) // stride + 1
    Wo = (W + 2 * padding - k) // stride + 1
    xh = jnp.transpose(x_nchw, (0, 2, 3, 1)).astype(dtype)      # NHWC + bf16 once
    xh = jnp.pad(xh, ((0, 0), (padding, padding), (padding, padding), (0, 0)))
    cols = [xh[:, i:i + Ho * stride:stride, j:j + Wo * stride:stride, :]
            for i in range(k) for j in range(k)]
    xc = jnp.concatenate(cols, axis=-1)                          # (N,Ho,Wo, k*k*C)
    return xc.reshape(N * Ho * Wo, k * k * C), Ho, Wo
# TODO(synk): for bandwidth-poor v5e, fold the kh*kw=9 accumulation into the kernel
# (tap grid axis over shifted NHWC windows feeding the existing VMEM accumulator)
# to avoid materializing the 9x im2col matrix in HBM at all.


def _vmem_bytes(tm, tk, coutp, out_itemsize):
    return (2 * tm * tk * 2                 # bf16 patch tile, double-buffered
            + 2 * tk * coutp * 2            # bf16 weight slab (counted dbl-buffered)
            + 2 * coutp * 4                 # f32 bias (dbl-buffered)
            + 2 * tm * coutp * out_itemsize # output tile, double-buffered
            + tm * coutp * 4)               # f32 accumulator scratch


# ---------------------------------------------------------------------------
# Forward
# ---------------------------------------------------------------------------
def block_forward(x_nchw, weight, bias, *, stride=1, padding=1, eps=1e-8,
                  neg_slope=0.2, final=False, tm_target=512,
                  out_dtype=jnp.bfloat16):
    """Equivalent of Block.forward.

    x_nchw : (N, Cin, H, W)
    weight : (Cout, Cin, kh, kw)   (PyTorch Conv2d layout)
    bias   : (Cout,)
    returns: (N, Cout, Ho, Wo) in `out_dtype` (bf16 by default; the conv/norm/act
             math accumulates in f32 inside the kernel).
    """
    Cout, Cin, kh, kw = weight.shape
    assert kh == kw
    k = kh
    N = x_nchw.shape[0]

    x_mat, Ho, Wo = _im2col_nhwc(x_nchw, k, stride, padding, jnp.bfloat16)  # (M, K)
    M, K = x_mat.shape

    # Lane-dense output: channels padded to a multiple of 128 (unmasked vst).
    # TODO(synk): for Cout << 128 the padded store still wastes lanes; pack several
    # row-tiles' channels into one 128-wide slab if such layers ever become hot.
    Coutp = _round_up(Cout, 128)
    out_isz = jnp.dtype(out_dtype).itemsize

    # Generation-aware VMEM budget (v7x: 64 MiB per TC; v5e/v6e: 128 MiB).
    cap = _vmem_capacity_bytes()
    budget = max(8 * 1024 * 1024, cap // 2 - 4 * 1024 * 1024)   # 28 MiB on v7x
    cap_limit = (cap * 13) // 16                                 # headroom under cap

    # Row-tile selection: big tiles, 16-aligned (bf16 sublane tiling), >=2 grid
    # steps with an EVEN count so both v7x TensorCores get work, inside budget.
    tm = min(tm_target, _round_up(M, 16))
    if M > 256 and _cdiv(M, tm) < 2:
        tm = _round_up(_cdiv(M, 2), 16)
    nt = _cdiv(M, tm)
    if nt > 1 and nt % 2 == 1:
        tm = _round_up(_cdiv(M, nt + 1), 16)
    while tm > 256 and _vmem_bytes(tm, K, Coutp, out_isz) > budget:
        tm = max(256, _round_up(tm // 2, 16))
    tm = max(16, min(tm, _round_up(M, 16)))

    # K-reduction tiling as the pressure valve for very large Cin*Cout: keeps tm
    # big and the resident weight slab bounded instead of shrinking tm to 128.
    tk = K
    while tk > 512 and _vmem_bytes(tm, tk, Coutp, out_isz) > budget:
        tk = max(512, _round_up(_cdiv(tk, 2), 128))
    Kp = _round_up(K, tk)
    nkt = Kp // tk

    Mp = _round_up(M, tm)
    if Mp != M or Kp != K:
        x_mat = jnp.pad(x_mat, ((0, Mp - M), (0, Kp - K)))

    # bf16 operands halve HBM traffic and double MXU throughput; accumulate f32.
    w_mat = jnp.transpose(weight, (2, 3, 1, 0)).reshape(K, Cout)   # (kh,kw,cin) rows
    w_bf = jnp.pad(w_mat, ((0, Kp - K), (0, Coutp - Cout))).astype(jnp.bfloat16)
    b_mat = jnp.pad(bias.astype(jnp.float32), (0, Coutp - Cout)).reshape(1, Coutp)

    kernel = functools.partial(_block_kernel, nkt=nkt, inv_cout=1.0 / Cout,
                               eps=eps, neg_slope=neg_slope, final=final)

    vmem_need = _vmem_bytes(tm, tk, Coutp, out_isz)
    vmem_limit = int(min(cap_limit, max(32 * 1024 * 1024, 2 * vmem_need)))

    # TODO(synk): the grid-invariant weight/bias specs could use
    # pipeline_mode=pl.Buffered(1) to drop their redundant second buffer; the
    # VMEM estimate above conservatively counts them double-buffered instead.
    out = pl.pallas_call(
        kernel,
        out_shape=jax.ShapeDtypeStruct((Mp, Coutp), out_dtype),
        grid_spec=pltpu.PrefetchScalarGridSpec(
            num_scalar_prefetch=0,
            grid=(Mp // tm, nkt),
            in_specs=[
                pl.BlockSpec((tm, tk), lambda i, kk: (i, kk)),
                pl.BlockSpec((tk, Coutp), lambda i, kk: (kk, 0)),
                pl.BlockSpec((1, Coutp), lambda i, kk: (0, 0)),
            ],
            out_specs=pl.BlockSpec((tm, Coutp), lambda i, kk: (i, 0)),
            scratch_shapes=[pltpu.VMEM((tm, Coutp), jnp.float32)],
        ),
        compiler_params=pltpu.CompilerParams(
            dimension_semantics=("parallel", "arbitrary"),
            vmem_limit_bytes=vmem_limit,
        ),
    )(x_mat, w_bf, b_mat)

    out = out[:M, :Cout]                     # drop row / channel padding (in bf16)
    # TODO(synk): return NHWC directly when the downstream consumer accepts it;
    # the transpose below (done in bf16, half the bytes) is kept only for PyTorch
    # NCHW layout parity.
    return out.reshape(N, Ho, Wo, Cout).transpose(0, 3, 1, 2)


# ---------------------------------------------------------------------------
# Pure-JAX reference for sanity checking
# ---------------------------------------------------------------------------
def _reference(x_nchw, weight, bias, *, stride=1, padding=1, eps=1e-8,
               neg_slope=0.2, final=False):
    y = lax.conv_general_dilated(
        x_nchw, weight,
        window_strides=(stride, stride),
        padding=((padding, padding), (padding, padding)),
        dimension_numbers=("NCHW", "OIHW", "NCHW"),
    ) + bias.reshape(1, -1, 1, 1)
    y = y / jnp.sqrt(jnp.mean(y * y, axis=1, keepdims=True) + eps)
    return jnp.tanh(y) if final else jnp.where(y > 0, y, neg_slope * y)


if __name__ == "__main__":
    key = jax.random.PRNGKey(0)
    k_x, k_w, k_b = jax.random.split(key, 3)

    batch, in_channels, out_channels = 2, 4, 8
    H = W = 16
    ksize = 3

    x = jax.random.normal(k_x, (batch, in_channels, H, W), dtype=jnp.float32)
    fan_in = in_channels * ksize * ksize
    bound = 1.0 / (fan_in ** 0.5)
    weight = jax.random.uniform(k_w, (out_channels, in_channels, ksize, ksize),
                                minval=-bound, maxval=bound, dtype=jnp.float32)
    bias = jax.random.uniform(k_b, (out_channels,),
                              minval=-bound, maxval=bound, dtype=jnp.float32)

    out = jax.block_until_ready(block_forward(x, weight, bias))
    assert out.shape == (batch, out_channels, H, W)
    out_f32 = out.astype(jnp.float32)

    # Check against a reference using the same bf16 operand rounding; the kernel
    # additionally rounds its output to bf16, hence the ~bf16-ULP tolerance.
    xq = x.astype(jnp.bfloat16).astype(jnp.float32)
    wq = weight.astype(jnp.bfloat16).astype(jnp.float32)
    ref_bf = _reference(xq, wq, bias)
    assert jnp.allclose(out_f32, ref_bf, atol=2e-2, rtol=2e-2), "mismatch vs bf16 reference"

    # Loose check against the full-f32 reference (operand + output bf16 rounding).
    ref_f32 = _reference(x, weight, bias)
    assert jnp.allclose(out_f32, ref_f32, atol=6e-2, rtol=6e-2), "mismatch vs f32 reference"

    # final=True path (Tanh activation).
    out_t = jax.block_until_ready(block_forward(x, weight, bias, final=True))
    assert out_t.shape == (batch, out_channels, H, W)
    ref_t = _reference(xq, wq, bias, final=True)
    assert jnp.allclose(out_t.astype(jnp.float32), ref_t, atol=2e-2, rtol=2e-2), \
        "mismatch vs tanh reference"

    # Odd spatial size / non-16-multiple row count exercises M padding and the crop.
    x2 = jax.random.normal(jax.random.PRNGKey(1), (1, 3, 9, 9), dtype=jnp.float32)
    w2 = jax.random.uniform(jax.random.PRNGKey(2), (6, 3, 3, 3),
                            minval=-0.2, maxval=0.2, dtype=jnp.float32)
    b2 = jnp.zeros((6,), dtype=jnp.float32)
    out2 = jax.block_until_ready(block_forward(x2, w2, b2))
    assert out2.shape == (1, 6, 9, 9)
    ref2 = _reference(x2.astype(jnp.bfloat16).astype(jnp.float32),
                      w2.astype(jnp.bfloat16).astype(jnp.float32), b2)
    assert jnp.allclose(out2.astype(jnp.float32), ref2, atol=2.5e-2, rtol=2.5e-2), \
        "mismatch on padded-shape case"

    print("KERNEL_OK")
</pallas_src>

<mosaic_0001>
module attributes {stable_mosaic.version = 11 : i64} {
  func.func @_block_kernel(%arg0: i32, %arg1: i32, %arg2: memref<256x36xbf16, #tpu.memory_space<vmem>>, %arg3: memref<36x128xbf16, #tpu.memory_space<vmem>>, %arg4: memref<1x128xf32, #tpu.memory_space<vmem>>, %arg5: memref<256x128xbf16, #tpu.memory_space<vmem>>, %arg6: memref<256x128xf32, #tpu.memory_space<vmem>>) attributes {dimension_semantics = [#tpu.dimension_semantics<parallel>, #tpu.dimension_semantics<arbitrary>], iteration_bounds = array<i64: 2, 1>, scalar_prefetch = 0 : i64, scratch_operands = 1 : i64, tpu.core_type = #tpu.core_type<tc>, window_params = [{transform_indices = @transform_0, window_bounds = array<i64: 256, 36>}, {transform_indices = @transform_1, window_bounds = array<i64: 36, 128>}, {pipeline_mode = #tpu.pipeline_mode<synchronous>, transform_indices = @transform_2, window_bounds = array<i64: 1, 128>}, {transform_indices = @transform_3, window_bounds = array<i64: 256, 128>}]} {
    %c0 = arith.constant 0 : index
    %c0_0 = arith.constant 0 : index
    %0 = vector.load %arg2[%c0, %c0_0] : memref<256x36xbf16, #tpu.memory_space<vmem>>, vector<256x36xbf16>
    %c0_1 = arith.constant 0 : index
    %c0_2 = arith.constant 0 : index
    %1 = vector.load %arg3[%c0_1, %c0_2] : memref<36x128xbf16, #tpu.memory_space<vmem>>, vector<36x128xbf16>
    %cst = arith.constant dense<0.000000e+00> : vector<256x128xf32>
    %2 = tpu.matmul %0, %1, %cst {dimension_numbers = #tpu.dot_dimension_numbers<[1], [0], [0], [1], [0, 0, 1, 1], [], []>} : vector<256x36xbf16>, vector<36x128xbf16>, vector<256x128xf32> -> vector<256x128xf32>
    %c0_3 = arith.constant 0 : index
    %c0_4 = arith.constant 0 : index
    %3 = vector.load %arg4[%c0_3, %c0_4] : memref<1x128xf32, #tpu.memory_space<vmem>>, vector<1x128xf32>
    %4 = vector.broadcast %3 : vector<1x128xf32> to vector<256x128xf32>
    %5 = arith.addf %2, %4 : vector<256x128xf32>
    %6 = arith.mulf %5, %5 : vector<256x128xf32>
    %cst_5 = arith.constant dense<0.000000e+00> : vector<256xf32>
    %7 = vector.multi_reduction <add>, %6, %cst_5 [1] : vector<256x128xf32> to vector<256xf32>
    %8 = vector.shape_cast %7 : vector<256xf32> to vector<256x1xf32>
    %cst_6 = arith.constant 1.250000e-01 : f32
    %9 = vector.broadcast %cst_6 : f32 to vector<256x1xf32>
    %10 = arith.mulf %8, %9 : vector<256x1xf32>
    %cst_7 = arith.constant 9.99999993E-9 : f32
    %11 = vector.broadcast %cst_7 : f32 to vector<256x1xf32>
    %12 = arith.addf %10, %11 : vector<256x1xf32>
    %13 = math.rsqrt %12 : vector<256x1xf32>
    %14 = vector.broadcast %13 : vector<256x1xf32> to vector<256x128xf32>
    %15 = arith.mulf %5, %14 : vector<256x128xf32>
    %cst_8 = arith.constant 2.000000e-01 : f32
    %16 = vector.broadcast %cst_8 : f32 to vector<256x128xf32>
    %17 = arith.mulf %16, %15 : vector<256x128xf32>
    %18 = arith.maximumf %15, %17 : vector<256x128xf32>
    %19 = arith.truncf %18 : vector<256x128xf32> to vector<256x128xbf16>
    %c0_9 = arith.constant 0 : index
    %c0_10 = arith.constant 0 : index
    %20 = vector.load %arg5[%c0_9, %c0_10] : memref<256x128xbf16, #tpu.memory_space<vmem>>, vector<256x128xbf16>
    tpu.vector_store %arg5[%c0_9, %c0_10], %19 {strides = array<i32>} : memref<256x128xbf16, #tpu.memory_space<vmem>>, vector<256x128xbf16>,
    return
  }
  func.func @transform_0(%arg0: i32, %arg1: i32) -> (i32, i32) {
    %c0_i32 = arith.constant 0 : i32
    return %arg0, %arg1 : i32, i32
  }
  func.func @transform_1(%arg0: i32, %arg1: i32) -> (i32, i32) {
    %c0_i32 = arith.constant 0 : i32
    %c0_i32_0 = arith.constant 0 : i32
    return %arg1, %c0_i32 : i32, i32
  }
  func.func @transform_2(%arg0: i32, %arg1: i32) -> (i32, i32) {
    %c0_i32 = arith.constant 0 : i32
    %c0_i32_0 = arith.constant 0 : i32
    %c0_i32_1 = arith.constant 0 : i32
    return %c0_i32, %c0_i32_0 : i32, i32
  }
  func.func @transform_3(%arg0: i32, %arg1: i32) -> (i32, i32) {
    %c0_i32 = arith.constant 0 : i32
    %c0_i32_0 = arith.constant 0 : i32
    return %arg0, %c0_i32 : i32, i32
  }
}

</mosaic_0001>

<bundles_post_ra>
// kernel: tpu_custom_call.1
= control target key start
LH: loop header
LB: loop body
LE: loop exit
PB: predicated region body
PF: predicated region fallthrough
CT: control target
= control target key end

     0   :  { %8 = vsyncpa [#allocation4], 0  ;;  %s2013_s0 = inlined_call_operand.vmem [shape: bf16[512,36], index: 0, kind: input, shape index: {}]   ;;  %s2014_s1 = inlined_call_operand.vmem [shape: bf16[36,128], index: 1, kind: input, shape index: {}]   ;;  %s2015_s2 = inlined_call_operand.vmem [shape: f32[1,128], index: 2, kind: input, shape index: {}]   ;;  %s2016_s3 = inlined_call_operand.hbm [shape: bf16[512,128], index: 3, kind: output, shape index: {}]  }
   0x1   :  { %10 = vsyncpa [#allocation4 + $0x1], 0  ;;  %s1637_s12 = smov 0   ;;  %s1639_s13 = smov 0  }
   0x2   :  { %s1641_s14 = smov 0   ;;  %s1643_s15 = smov 0  }
   0x3   :  { %s1645_s16 = smov 0   ;;  %s1647_s17 = smov 0  }
   0x4 LB: > { %s1121_s18 = sadd.s32 4294967295, %s1612_s17   ;;  %s1122_s19 = sadd.s32 4294967294, %s1612_s17   ;;  %s1612_s17 = sphi %s1647_s17, %s16_s17   ;;  %s1608_s16 = sphi %s1645_s16, %s2023_s16   ;;  %s1604_s15 = sphi %s1643_s15, %s2022_s15   ;;  %s1600_s14 = sphi %s1641_s14, %s2021_s14   ;;  %s1596_s13 = sphi %s1639_s13, %s2020_s13   ;;  %s1592_s12 = sphi %s1637_s12, %s2019_s12  }
   0x5   : > { %s28_s20 = sadd.s32 1, %s1608_s16  ;;  %s110_s21 = sadd.s32 1, %s1600_s14 }
   0x6   : > { %p30_p0 = scmp.ge.s32.totalorder %s28_s20, 2  ;;  %p120_p1 = scmp.ne.s32.totalorder %s1600_s14, %s1596_s13 }
   0x7   : > { %p121_p2 = scmp.eq.s32.totalorder %s1121_s18, 1  ;;  %p126_p3 = scmp.ne.s32.totalorder %s1596_s13, %s1592_s12 }
   0x8   : > { %s2025_s20 = smov (%p30_p0, %s28_s20), 0  ;;  %p127_p5 = scmp.eq.s32.totalorder %s1122_s19, 1 }
   0x9   : > { %p1677_p4 = por %p121_p2, %p120_p1  ;;  %s107_s23 = ssub.s32 %s1608_s16, %s2025_s20 }
   0xa   : > { %p1126_p6 = scmp.ge.s32.totalorder %s1612_s17, 1  ;;  %p108_p7 = scmp.eq.s32.totalorder %s107_s23, 0 }
   0xb   : > { %p1684_p8 = por %p127_p5, %p126_p3  ;;  %p169_p9 = scmp.lt.s32.totalorder %s1612_s17, 3 }
   0xc   : > { %s1690_s25 = scalar_select %p108_p7, %s1600_s14, %s110_s21  }
   0xd   : > { %p170_p10 = pnand %p1126_p6, %p169_p9 }
   0xe   : > { %s1128_s30 = sshll.u32 (!%p170_p10), %s1604_s15, 5  ;;  %s198_s18 = sand.u32 (!%p170_p10), 1, %s1596_s13  }
   0xf   : > { %173 = sbr.rel (%p170_p10) target bundleno = 469 (0x1d5), region = 32  ;;  %p202_p11 = scmp.lt.s32.totalorder (!%p170_p10), %s1128_s30, 63 }
  0x10   : > { %s1127_s19 = sshll.u32 (!%p170_p10), %s198_s18, 7  ;;  %s1235_s23 = sshll.u32 (!%p170_p10), %s1604_s15, 11 }
  0x11   : > { %s1913_s21 = scalar_lea.vmem (!%p170_p10), [#allocation3], %s1127_s19  ;;  %s1961_s29 = scalar_lea.hbm (!%p170_p10), %s2016_s3, %s1235_s23 }
  0x12   : > { %s1033_s26 = sshll.u32 (!%p170_p10), %s1913_s21, 4  ;;  %s1614_s4 = smov (!%p170_p10), [#allocation3]   ;;  %s1963_s26 = int_to_ptr.vmem [resolvable:$true] %s1033_s26 }
  0x13   : > { %s1536_s15 = scalar_lea.vmem (!%p170_p10), %s1963_s26, 2048  ;;  %s1540_s5 = sshll.u32 (!%p170_p10), %s1614_s4, 4  ;;  %s1541_s5 = int_to_ptr.vmem [resolvable:$false] %s1540_s5 }
  0x14   : > { %v1453_v0 = vld [vmem:[%s2014_s1 + $0x10] ss:$0 sps:$4 sm:$0x33]   ;;  %vm406_vm0 = vcmask 1041408   ;;  %v1454_v1 = vld [vmem:[%s2014_s1 + $0x8] sm:$0xff]   ;;  %v1455_v3 = vld [vmem:[%s2014_s1] sm:$0xff]   ;;  %p1537_p12 = scmp.ne.s32.totalorder %s1963_s26, %s1536_s15  ;;  %p1543_p1 = scmp.lt.s32.totalorder %s1963_s26, %s1541_s5 }
  0x15   : > { %1394 = vmatprep.subr.msk.bf16.mxu0 %vm406_vm0, %v1453_v0  ;;  %1395 = vmatprep.subr.msk.bf16.mxu1 %vm406_vm0, %v1453_v0  ;;  %v408_v2 = vsel %vm406_vm0, %v1453_v0, 0  ;;  %s2027_s30 = smov (!%p202_p11, %s1128_s30), 63  ;;  %vm357_vm1 = vcmask 293888   ;;  %v1742_v20 = vld [vmem:[%s2015_s2] ss:$0 sm:$0xff] }
  0x16   : > { %1351 = vmatpush3.bf16.msra.mxu0 %v408_v2  ;;  %1391 = vmatpush3.bf16.msra.mxu1 %v408_v2  ;;  %s1129_s6 = sshll.u32 %s2027_s30, 2  ;;  %s1968_s30 = scalar_lea.sflag [#allocation4], %s198_s18 }
  0x17   : > { %1352 = vmatprep.subr.bf16.mxu0 %v1454_v1  ;;  %1389 = vmatprep.subr.bf16.mxu1 %v1454_v1  ;;  %s1705_s9 = scalar_lea.vmem %s2013_s0, %s1129_s6  ;;  %p1538_p13 = pnand %p1537_p12, %p1677_p4 }
  0x18   : > { %v1456_v4 = vld [vmem:[%s1705_s9] sm:$0xff]   ;;  %v1458_v6 = vld [vmem:[%s1705_s9 + $0x8] sm:$0xff]   ;;  %v1460_v8 = vld [vmem:[%s1705_s9 + $0x10] sm:$0xff]   ;;  %s1542_s6 = scalar_lea.vmem %s1541_s5, 4096 }
  0x19   : > { %v1457_v5 = vld [vmem:[%s1705_s9 + $0x40] sm:$0xff]   ;;  %1356 = vmatprep.mubr.msk.bf16.mxu0 %vm357_vm1, %v1456_v4  ;;  %v1459_v7 = vld [vmem:[%s1705_s9 + $0x48] sm:$0xff]   ;;  %v1462_v9 = vld [vmem:[%s1705_s9 + $0x50] sm:$0xff]   ;;  %p1539_p0 = pneg %p1538_p13  ;;  %p1544_p2 = scmp.lt.s32.totalorder %s1542_s6, %s1536_s15 }
  0x1a   : > { %1353 = vmatpush3.bf16.msra.mxu0 %v1454_v1  ;;  %1392 = vmatpush3.bf16.msra.mxu1 %v1454_v1  ;;  %v1461_v10 = vld [vmem:[%s1705_s9 + $0x18] sm:$0xff]   ;;  %v1464_v12 = vld [vmem:[%s1705_s9 + $0x20] sm:$0xff]   ;;  %v1465_v14 = vld [vmem:[%s1705_s9 + $0x28] sm:$0xff]  }
  0x1b   : > { %1354 = vmatprep.subr.bf16.mxu0 %v1455_v3  ;;  %1390 = vmatprep.subr.bf16.mxu1 %v1455_v3  ;;  %v1463_v11 = vld [vmem:[%s1705_s9 + $0x58] sm:$0xff]   ;;  %v1466_v13 = vld [vmem:[%s1705_s9 + $0x60] sm:$0xff]   ;;  %v1467_v15 = vld [vmem:[%s1705_s9 + $0x68] sm:$0xff]   ;;  %p1545_p3 = por %p1544_p2, %p1543_p1 }
  0x1c   : > { %1372 = vmatprep.mubr.msk.bf16.mxu1 %vm357_vm1, %v1457_v5  ;;  %v1468_v16 = vld [vmem:[%s1705_s9 + $0x30] sm:$0xff]   ;;  %v1469_v18 = vld [vmem:[%s1705_s9 + $0x38] sm:$0xff]  }
  0x1d   : > { %v1470_v17 = vld [vmem:[%s1705_s9 + $0x70] sm:$0xff]   ;;  %v1471_v19 = vld [vmem:[%s1705_s9 + $0x78] sm:$0xff]   ;;  %p1546_p5 = pnand %p1545_p3, %p1539_p0 }
  0x1e   : > { %1355 = vmatpush3.bf16.msra.mxu0 %v1455_v3  ;;  %1393 = vmatpush3.bf16.msra.mxu1 %v1455_v3 }
  0x21   : > { %1357 = vmatmul.mubr.msk.bf16.vlgmr.msra.gmra.mxu0 %vm357_vm1, %v1458_v6  ;;  %1373 = vmatmul.mubr.msk.bf16.vlgmr.msra.gmra.mxu1 %vm357_vm1, %v1459_v7 }
  0x22   : > { %1360 = vmatprep.mubr.msk.bf16.mxu0 %vm357_vm1, %v1460_v8  ;;  %1376 = vmatprep.mubr.msk.bf16.mxu1 %vm357_vm1, %v1462_v9 }
  0x29   : > { %1361 = vmatmul.mubr.msk.bf16.gmra.mxu0 %vm357_vm1, %v1461_v10  ;;  %1377 = vmatmul.mubr.msk.bf16.gmra.mxu1 %vm357_vm1, %v1463_v11 }
  0x2a   : > { %1364 = vmatprep.mubr.msk.bf16.mxu0 %vm357_vm1, %v1464_v12  ;;  %1380 = vmatprep.mubr.msk.bf16.mxu1 %vm357_vm1, %v1466_v13 }
  0x31   : > { %1365 = vmatmul.mubr.msk.bf16.gmra.mxu0 %vm357_vm1, %v1465_v14  ;;  %1381 = vmatmul.mubr.msk.bf16.gmra.mxu1 %vm357_vm1, %v1467_v15 }
  0x32   : > { %1368 = vmatprep.mubr.msk.bf16.mxu0 %vm357_vm1, %v1468_v16  ;;  %1384 = vmatprep.mubr.msk.bf16.mxu1 %vm357_vm1, %v1470_v17 }
  0x39   : > { %1369 = vmatmul.mubr.msk.bf16.gmra.mxu0 %vm357_vm1, %v1469_v18  ;;  %1385 = vmatmul.mubr.msk.bf16.gmra.mxu1 %vm357_vm1, %v1471_v19 }
  0xe1   : > { %v1358_v21 = vpop.f32.mrf.mxu0  ;;  %v1374_v22 = vpop.f32.mrf.mxu1 }
  0xe2   : > { %v1745_v23 = vadd.f32 %v1358_v21, %v1742_v20  ;;  %v1748_v24 = vadd.f32 %v1374_v22, %v1742_v20 }
  0xe3   : > { %v444_v25 = vpop.f32.mrf.mxu0  ;;  %v508_v26 = vpop.f32.mrf.mxu1 }
  0xe4   : > { %v1751_v27 = vadd.f32 %v1742_v20, %v444_v25  ;;  %v589_v28 = vmul.f32 %v1748_v24, %v1748_v24  ;;  %v573_v29 = vmul.f32 %v1745_v23, %v1745_v23  ;;  %v1761_v34 = vadd.f32 %v1742_v20, %v508_v26 }
  0xe5   : > { %v1359_v30 = vpop.f32.mrf.mxu0  ;;  %v1375_v31 = vpop.f32.mrf.mxu1 }
  0xe6   : > { %v1758_v32 = vadd.f32 %v1359_v30, %v1742_v20  ;;  %639 = vadd.xlane.f32.xlu0 %v589_v28  ;;  %607 = vadd.xlane.f32.xlu1 %v573_v29  ;;  %v1764_v35 = vadd.f32 %v1375_v31, %v1742_v20  ;;  %v571_v37 = vmul.f32 %v1751_v27, %v1751_v27 }
  0xe7   : > { %v447_v33 = vpop.f32.mrf.mxu0  ;;  %v511_v38 = vpop.f32.mrf.mxu1  ;;  %v587_v45 = vmul.f32 %v1761_v34, %v1761_v34 }
  0xe8   : > { %v574_v36 = vmul.f32 %v1758_v32, %v1758_v32  ;;  %v1771_v42 = vadd.f32 %v1742_v20, %v447_v33  ;;  %v1774_v43 = vadd.f32 %v1742_v20, %v511_v38  ;;  %v590_v44 = vmul.f32 %v1764_v35, %v1764_v35 }
  0xe9   : > { %v1362_v39 = vpop.f32.mrf.mxu0  ;;  %v1378_v41 = vpop.f32.mrf.mxu1 }
  0xea   : > { %609 = vadd.xlane.f32.xlu1 %v574_v36  ;;  %603 = vadd.xlane.f32.xlu0 %v571_v37  ;;  %v1781_v48 = vadd.f32 %v1362_v39, %v1742_v20  ;;  %v588_v50 = vmul.f32 %v1774_v43, %v1774_v43  ;;  %v572_v51 = vmul.f32 %v1771_v42, %v1771_v42 }
  0xeb   : > { %v460_v40 = vpop.f32.mrf.mxu0  ;;  %v524_v47 = vpop.f32.mrf.mxu1  ;;  %v1791_v53 = vadd.f32 %v1378_v41, %v1742_v20 }
  0xec   : > { %v577_v56 = vmul.f32 %v1781_v48, %v1781_v48  ;;  %v1801_v59 = vadd.f32 %v1742_v20, %v460_v40  ;;  %v1811_v2 = vadd.f32 %v1742_v20, %v524_v47 }
  0xed   : > { %v1363_v46 = vpop.f32.mrf.mxu0  ;;  %v1379_v52 = vpop.f32.mrf.mxu1  ;;  %v593_v62 = vmul.f32 %v1791_v53, %v1791_v53 }
  0xee   : > { %641 = vadd.xlane.f32.xlu1 %v590_v44  ;;  %635 = vadd.xlane.f32.xlu0 %v587_v45  ;;  %v1784_v49 = vadd.f32 %v1363_v46, %v1742_v20  ;;  %v1794_v54 = vadd.f32 %v1379_v52, %v1742_v20  ;;  %v575_v5 = vmul.f32 %v1801_v59, %v1801_v59 }
  0xef   : > { %v463_v57 = vpop.f32.mrf.mxu0  ;;  %v527_v63 = vpop.f32.mrf.mxu1  ;;  %v591_v11 = vmul.f32 %v1811_v2, %v1811_v2 }
  0xf0   : > { %v578_v55 = vmul.f32 %v1784_v49, %v1784_v49  ;;  %v1804_v60 = vadd.f32 %v1742_v20, %v463_v57  ;;  %v594_v61 = vmul.f32 %v1794_v54, %v1794_v54  ;;  %v1814_v3 = vadd.f32 %v1742_v20, %v527_v63 }
  0xf1   : > { %v1366_v58 = vpop.f32.mrf.mxu0  ;;  %v1382_v1 = vpop.f32.mrf.mxu1 }
  0xf2   : > { %637 = vadd.xlane.f32.xlu1 %v588_v50  ;;  %605 = vadd.xlane.f32.xlu0 %v572_v51  ;;  %v576_v4 = vmul.f32 %v1804_v60, %v1804_v60  ;;  %v1821_v8 = vadd.f32 %v1366_v58, %v1742_v20  ;;  %v592_v10 = vmul.f32 %v1814_v3, %v1814_v3 }
  0xf3   : > { %v476_v0 = vpop.f32.mrf.mxu0  ;;  %v540_v7 = vpop.f32.mrf.mxu1  ;;  %v1831_v14 = vadd.f32 %v1382_v1, %v1742_v20 }
  0xf4   : > { %v581_v17 = vmul.f32 %v1821_v8, %v1821_v8  ;;  %v1841_v21 = vadd.f32 %v1742_v20, %v476_v0  ;;  %v1851_v30 = vadd.f32 %v1742_v20, %v540_v7 }
  0xf5   : > { %v1367_v6 = vpop.f32.mrf.mxu0  ;;  %v1383_v13 = vpop.f32.mrf.mxu1  ;;  %v597_v26 = vmul.f32 %v1831_v14, %v1831_v14 }
  0xf6   : > { %617 = vadd.xlane.f32.xlu1 %v578_v55  ;;  %615 = vadd.xlane.f32.xlu0 %v577_v56  ;;  %v1824_v9 = vadd.f32 %v1367_v6, %v1742_v20  ;;  %v1834_v15 = vadd.f32 %v1383_v13, %v1742_v20  ;;  %v579_v36 = vmul.f32 %v1841_v21, %v1841_v21 }
  0xf7   : > { %v479_v12 = vpop.f32.mrf.mxu0  ;;  %v543_v19 = vpop.f32.mrf.mxu1  ;;  %v595_v44 = vmul.f32 %v1851_v30, %v1851_v30 }
  0xf8   : > { %v582_v16 = vmul.f32 %v1824_v9, %v1824_v9  ;;  %v1844_v22 = vadd.f32 %v1742_v20, %v479_v12  ;;  %v598_v25 = vmul.f32 %v1834_v15, %v1834_v15  ;;  %v1854_v31 = vadd.f32 %v1742_v20, %v543_v19 }
  0xf9   : > { %v1370_v18 = vpop.f32.mrf.mxu0  ;;  %v1386_v29 = vpop.f32.mrf.mxu1 }
  0xfa   : > { %649 = vadd.xlane.f32.xlu1 %v594_v61  ;;  %647 = vadd.xlane.f32.xlu0 %v593_v62  ;;  %v580_v33 = vmul.f32 %v1844_v22, %v1844_v22  ;;  %v1861_v39 = vadd.f32 %v1370_v18, %v1742_v20  ;;  %v596_v41 = vmul.f32 %v1854_v31, %v1854_v31 }
  0xfb   : > { %v492_v28 = vpop.f32.mrf.mxu0  ;;  %v556_v38 = vpop.f32.mrf.mxu1  ;;  %v1891_v62 = vadd.f32 %v1386_v29, %v1742_v20 }
  0xfc   : > { %v1871_v47 = vadd.f32 %v1742_v20, %v492_v28  ;;  %v585_v52 = vmul.f32 %v1861_v39, %v1861_v39  ;;  %v1881_v56 = vadd.f32 %v1742_v20, %v556_v38 }
  0xfd   : > { %v1371_v37 = vpop.f32.mrf.mxu0  ;;  %v1387_v46 = vpop.f32.mrf.mxu1 }
  0xfe   : > { %613 = vadd.xlane.f32.xlu1 %v576_v4  ;;  %611 = vadd.xlane.f32.xlu0 %v575_v5  ;;  %v1864_v40 = vadd.f32 %v1371_v37, %v1742_v20  ;;  %v583_v61 = vmul.f32 %v1871_v47, %v1871_v47  ;;  %v1894_v63 = vadd.f32 %v1387_v46, %v1742_v20 }
  0xff   : > { %v495_v45 = vpop.f32.mrf.mxu0  ;;  %v559_v55 = vpop.f32.mrf.mxu1  ;;  %v599_v1 = vmul.f32 %v1881_v56, %v1881_v56  ;;  %v601_v5 = vmul.f32 %v1891_v62, %v1891_v62 }
 0x100   : > { %v1874_v50 = vadd.f32 %v1742_v20, %v495_v45  ;;  %v586_v51 = vmul.f32 %v1864_v40, %v1864_v40  ;;  %v1884_v57 = vadd.f32 %v1742_v20, %v559_v55  ;;  %v602_v4 = vmul.f32 %v1894_v63, %v1894_v63 }
 0x102   : > { %645 = vadd.xlane.f32.xlu1 %v592_v10  ;;  %643 = vadd.xlane.f32.xlu0 %v591_v11  ;;  %v584_v58 = vmul.f32 %v1874_v50, %v1874_v50  ;;  %v600_v0 = vmul.f32 %v1884_v57, %v1884_v57 }
 0x106   : > { %625 = vadd.xlane.f32.xlu1 %v582_v16  ;;  %623 = vadd.xlane.f32.xlu0 %v581_v17 }
 0x10a   : > { %657 = vadd.xlane.f32.xlu1 %v598_v25  ;;  %655 = vadd.xlane.f32.xlu0 %v597_v26 }
 0x10e   : > { %621 = vadd.xlane.f32.xlu1 %v580_v33  ;;  %619 = vadd.xlane.f32.xlu0 %v579_v36 }
 0x112   : > { %653 = vadd.xlane.f32.xlu1 %v596_v41  ;;  %651 = vadd.xlane.f32.xlu0 %v595_v44 }
 0x116   : > { %633 = vadd.xlane.f32.xlu1 %v586_v51  ;;  %631 = vadd.xlane.f32.xlu0 %v585_v52 }
 0x11a   : > { %629 = vadd.xlane.f32.xlu1 %v584_v58  ;;  %627 = vadd.xlane.f32.xlu0 %v583_v61 }
 0x11e   : > { %661 = vadd.xlane.f32.xlu1 %v600_v0  ;;  %659 = vadd.xlane.f32.xlu0 %v599_v1 }
 0x122   : > { %665 = vadd.xlane.f32.xlu1 %v602_v4  ;;  %663 = vadd.xlane.f32.xlu0 %v601_v5 }
 0x16f   : > { %v640_v6 = vpop.xlane.xlu0 %639  ;;  %v608_v7 = vpop.xlane.xlu1 %607 }
 0x170   : > { %v685_v20 = vmul.f32 0.125, %v640_v6  ;;  %v669_v10 = vmul.f32 0.125, %v608_v7 }
 0x172   : > { %v717_v11 = vadd.f32 1e-08, %v685_v20  ;;  %v701_v12 = vadd.f32 1e-08, %v669_v10 }
 0x173   : > { %v610_v13 = vpop.xlane.xlu1 %609  ;;  %v604_v16 = vpop.xlane.xlu0 %603 }
 0x174   : > { %1472 = vrsqrt.f32 %v717_v11  ;;  %v670_v17 = vmul.f32 0.125, %v610_v13  ;;  %v667_v18 = vmul.f32 0.125, %v604_v16 }
 0x175   : > { %1474 = vrsqrt.f32 %v701_v12 }
 0x176   : > { %v702_v19 = vadd.f32 1e-08, %v670_v17  ;;  %v699_v25 = vadd.f32 1e-08, %v667_v18 }
 0x177   : > { %v642_v26 = vpop.xlane.xlu1 %641  ;;  %v636_v28 = vpop.xlane.xlu0 %635 }
 0x178   : > { %1476 = vrsqrt.f32 %v702_v19  ;;  %v686_v29 = vmul.f32 0.125, %v642_v26  ;;  %v683_v33 = vmul.f32 0.125, %v636_v28 }
 0x179   : > { %1478 = vrsqrt.f32 %v699_v25 }
 0x17a   : > { %v718_v36 = vadd.f32 1e-08, %v686_v29  ;;  %v715_v37 = vadd.f32 1e-08, %v683_v33 }
 0x17b   : > { %v638_v38 = vpop.xlane.xlu1 %637  ;;  %v606_v41 = vpop.xlane.xlu0 %605 }
 0x17c   : > { %1480 = vrsqrt.f32 %v718_v36  ;;  %v684_v44 = vmul.f32 0.125, %v638_v38  ;;  %v668_v45 = vmul.f32 0.125, %v606_v41 }
 0x17d   : > { %1482 = vrsqrt.f32 %v715_v37 }
 0x17e   : > { %v716_v46 = vadd.f32 1e-08, %v684_v44  ;;  %v700_v51 = vadd.f32 1e-08, %v668_v45 }
 0x17f   : > { %v618_v52 = vpop.xlane.xlu1 %617  ;;  %v616_v55 = vpop.xlane.xlu0 %615 }
 0x180   : > { %1484 = vrsqrt.f32 %v716_v46  ;;  %v674_v58 = vmul.f32 0.125, %v618_v52  ;;  %v673_v61 = vmul.f32 0.125, %v616_v55 }
 0x181   : > { %v1473_v0 = vpop.eup %1472  ;;  %1486 = vrsqrt.f32 %v700_v51 }
 0x182   : > { %v1475_v1 = vpop.eup %1474  ;;  %v706_v4 = vadd.f32 1e-08, %v674_v58  ;;  %v705_v5 = vadd.f32 1e-08, %v673_v61  ;;  %v781_v13 = vmul.f32 %v1473_v0, %v1748_v24 }
 0x183   : > { %v765_v6 = vmul.f32 %v1475_v1, %v1745_v23  ;;  %v650_v7 = vpop.xlane.xlu1 %649  ;;  %v648_v20 = vpop.xlane.xlu0 %647 }
 0x184   : > { %1488 = vrsqrt.f32 %v706_v4  ;;  %v690_v10 = vmul.f32 0.125, %v650_v7  ;;  %v689_v11 = vmul.f32 0.125, %v648_v20  ;;  %v813_v37 = vmul.f32 0.2, %v781_v13 }
 0x185   : > { %v1477_v12 = vpop.eup %1476  ;;  %v797_v16 = vmul.f32 0.2, %v765_v6  ;;  %1490 = vrsqrt.f32 %v705_v5 }
 0x186   : > { %v766_v17 = vmul.f32 %v1477_v12, %v1758_v32  ;;  %v722_v18 = vadd.f32 1e-08, %v690_v10  ;;  %v721_v19 = vadd.f32 1e-08, %v689_v11  ;;  %v1479_v28 = vpop.eup %1478  ;;  %v845_v4 = vmax.f32 %v781_v13, %v813_v37 }
 0x187   : > { %v614_v25 = vpop.xlane.xlu1 %613  ;;  %v612_v26 = vpop.xlane.xlu0 %611  ;;  %v829_v38 = vmax.f32 %v765_v6, %v797_v16  ;;  %v763_v46 = vmul.f32 %v1479_v28, %v1751_v27 }
 0x188   : > { %v798_v23 = vmul.f32 0.2, %v766_v17  ;;  %1492 = vrsqrt.f32 %v722_v18  ;;  %v672_v29 = vmul.f32 0.125, %v614_v25  ;;  %v671_v33 = vmul.f32 0.125, %v612_v26 }
 0x189   : > { %v1481_v36 = vpop.eup %1480  ;;  %1494 = vrsqrt.f32 %v721_v19  ;;  %v795_v20 = vmul.f32 0.2, %v763_v46 }
 0x18a   : > { %v1483_v24 = vpop.eup %1482  ;;  %v830_v41 = vmax.f32 %v766_v17, %v798_v23  ;;  %v782_v44 = vmul.f32 %v1481_v36, %v1764_v35  ;;  %v704_v32 = vadd.f32 1e-08, %v672_v29  ;;  %v703_v45 = vadd.f32 1e-08, %v671_v33 }
 0x18b   : > { %v779_v51 = vmul.f32 %v1483_v24, %v1761_v34  ;;  %v646_v52 = vpop.xlane.xlu1 %645  ;;  %v644_v55 = vpop.xlane.xlu0 %643  ;;  %v827_v36 = vmax.f32 %v763_v46, %v795_v20 }
 0x18c   : > { %v1244_v58 = vpack.c.bf16 %v830_v41, %v829_v38  ;;  %v814_v61 = vmul.f32 0.2, %v782_v44  ;;  %1496 = vrsqrt.f32 %v704_v32  ;;  %v688_v0 = vmul.f32 0.125, %v646_v52 }
 0x18d   : > { %v1485_v1 = vpop.eup %1484  ;;  %1498 = vrsqrt.f32 %v703_v45  ;;  %v687_v5 = vmul.f32 0.125, %v644_v55  ;;  %v811_v7 = vmul.f32 0.2, %v779_v51 }
 0x18e   : > { %v1487_v6 = vpop.eup %1486  ;;  %1316 = vst [vmem:[%s1913_s21 + $0x8] sm:$0xff] %v1244_v58   ;;  %v846_v35 = vmax.f32 %v782_v44, %v814_v61  ;;  %v780_v27 = vmul.f32 %v1485_v1, %v1774_v43  ;;  %v720_v34 = vadd.f32 1e-08, %v688_v0 }
 0x18f   : > { %v764_v10 = vmul.f32 %v1487_v6, %v1771_v42  ;;  %v719_v11 = vadd.f32 1e-08, %v687_v5  ;;  %v626_v12 = vpop.xlane.xlu1 %625  ;;  %v624_v16 = vpop.xlane.xlu0 %623  ;;  %v843_v23 = vmax.f32 %v779_v51, %v811_v7 }
 0x190   : > { %v1284_v13 = vpack.c.bf16 %v846_v35, %v845_v4  ;;  %v812_v17 = vmul.f32 0.2, %v780_v27  ;;  %1500 = vrsqrt.f32 %v720_v34  ;;  %v678_v18 = vmul.f32 0.125, %v626_v12 }
 0x191   : > { %v1489_v19 = vpop.eup %1488  ;;  %v796_v25 = vmul.f32 0.2, %v764_v10  ;;  %1502 = vrsqrt.f32 %v719_v11  ;;  %v677_v26 = vmul.f32 0.125, %v624_v16 }
 0x192   : > { %v1491_v28 = vpop.eup %1490  ;;  %1324 = vst [vmem:[%s1913_s21 + $0x48] sm:$0xff] %v1284_v13   ;;  %v844_v43 = vmax.f32 %v780_v27, %v812_v17  ;;  %v770_v29 = vmul.f32 %v1489_v19, %v1784_v49  ;;  %v710_v33 = vadd.f32 1e-08, %v678_v18 }
 0x193   : > { %v828_v42 = vmax.f32 %v764_v10, %v796_v25  ;;  %v769_v37 = vmul.f32 %v1491_v28, %v1781_v48  ;;  %v709_v38 = vadd.f32 1e-08, %v677_v26  ;;  %v658_v24 = vpop.xlane.xlu1 %657  ;;  %v656_v41 = vpop.xlane.xlu0 %655 }
 0x194   : > { %v1279_v44 = vpack.c.bf16 %v844_v43, %v843_v23  ;;  %v802_v32 = vmul.f32 0.2, %v770_v29  ;;  %1504 = vrsqrt.f32 %v710_v33  ;;  %v694_v45 = vmul.f32 0.125, %v658_v24 }
 0x195   : > { %v1493_v52 = vpop.eup %1492  ;;  %v1239_v55 = vpack.c.bf16 %v828_v42, %v827_v36  ;;  %v801_v51 = vmul.f32 0.2, %v769_v37  ;;  %1506 = vrsqrt.f32 %v709_v38  ;;  %v693_v58 = vmul.f32 0.125, %v656_v41 }
 0x196   : > { %v1495_v49 = vpop.eup %1494  ;;  %1323 = vst [vmem:[%s1913_s21 + $0x40] sm:$0xff] %v1279_v44   ;;  %v834_v46 = vmax.f32 %v770_v29, %v802_v32  ;;  %v786_v61 = vmul.f32 %v1493_v52, %v1794_v54  ;;  %v726_v0 = vadd.f32 1e-08, %v694_v45 }
 0x197   : > { %1240 = vst [vmem:[%s1913_s21] sm:$0xff] %v1239_v55   ;;  %v833_v48 = vmax.f32 %v769_v37, %v801_v51  ;;  %v785_v1 = vmul.f32 %v1495_v49, %v1791_v53  ;;  %v725_v4 = vadd.f32 1e-08, %v693_v58  ;;  %v622_v5 = vpop.xlane.xlu1 %621  ;;  %v620_v6 = vpop.xlane.xlu0 %619 }
 0x198   : > { %v818_v35 = vmul.f32 0.2, %v786_v61  ;;  %1508 = vrsqrt.f32 %v726_v0  ;;  %v676_v7 = vmul.f32 0.125, %v622_v5  ;;  %v675_v27 = vmul.f32 0.125, %v620_v6 }
 0x199   : > { %v1497_v34 = vpop.eup %1496  ;;  %v1254_v20 = vpack.c.bf16 %v834_v46, %v833_v48  ;;  %v817_v10 = vmul.f32 0.2, %v785_v1  ;;  %1510 = vrsqrt.f32 %v725_v4 }
 0x19a   : > { %v1499_v11 = vpop.eup %1498  ;;  %v850_v12 = vmax.f32 %v786_v61, %v818_v35  ;;  %v768_v54 = vmul.f32 %v1497_v34, %v1804_v60  ;;  %v708_v16 = vadd.f32 1e-08, %v676_v7  ;;  %v707_v13 = vadd.f32 1e-08, %v675_v27 }
 0x19b   : > { %1318 = vst [vmem:[%s1913_s21 + $0x18] sm:$0xff] %v1254_v20   ;;  %v849_v53 = vmax.f32 %v785_v1, %v817_v10  ;;  %v767_v17 = vmul.f32 %v1499_v11, %v1801_v59  ;;  %v654_v18 = vpop.xlane.xlu1 %653  ;;  %v652_v19 = vpop.xlane.xlu0 %651 }
 0x19c   : > { %v800_v25 = vmul.f32 0.2, %v768_v54  ;;  %1512 = vrsqrt.f32 %v708_v16  ;;  %v692_v26 = vmul.f32 0.125, %v654_v18  ;;  %v691_v28 = vmul.f32 0.125, %v652_v19 }
 0x19d   : > { %v1501_v23 = vpop.eup %1500  ;;  %v1294_v43 = vpack.c.bf16 %v850_v12, %v849_v53  ;;  %v799_v29 = vmul.f32 0.2, %v767_v17  ;;  %1514 = vrsqrt.f32 %v707_v13 }
 0x19e   : > { %v1503_v33 = vpop.eup %1502  ;;  %v832_v36 = vmax.f32 %v768_v54, %v800_v25  ;;  %v784_v60 = vmul.f32 %v1501_v23, %v1814_v3  ;;  %v724_v42 = vadd.f32 1e-08, %v692_v26  ;;  %v723_v37 = vadd.f32 1e-08, %v691_v28 }
 0x19f   : > { %1326 = vst [vmem:[%s1913_s21 + $0x58] sm:$0xff] %v1294_v43   ;;  %v831_v38 = vmax.f32 %v767_v17, %v799_v29  ;;  %v783_v59 = vmul.f32 %v1503_v33, %v1811_v2  ;;  %v634_v24 = vpop.xlane.xlu1 %633  ;;  %v632_v41 = vpop.xlane.xlu0 %631 }
 0x1a0   : > { %v816_v44 = vmul.f32 0.2, %v784_v60  ;;  %1516 = vrsqrt.f32 %v724_v42  ;;  %v682_v32 = vmul.f32 0.125, %v634_v24  ;;  %v681_v45 = vmul.f32 0.125, %v632_v41 }
 0x1a1   : > { %v1505_v52 = vpop.eup %1504  ;;  %v1249_v55 = vpack.c.bf16 %v832_v36, %v831_v38  ;;  %v815_v51 = vmul.f32 0.2, %v783_v59  ;;  %1518 = vrsqrt.f32 %v723_v37 }
 0x1a2   : > { %v1507_v58 = vpop.eup %1506  ;;  %v848_v49 = vmax.f32 %v784_v60, %v816_v44  ;;  %v774_v3 = vmul.f32 %v1505_v52, %v1824_v9  ;;  %v714_v46 = vadd.f32 1e-08, %v682_v32  ;;  %v713_v61 = vadd.f32 1e-08, %v681_v45 }
 0x1a3   : > { %1317 = vst [vmem:[%s1913_s21 + $0x10] sm:$0xff] %v1249_v55   ;;  %v847_v0 = vmax.f32 %v783_v59, %v815_v51  ;;  %v773_v2 = vmul.f32 %v1507_v58, %v1821_v8  ;;  %v630_v48 = vpop.xlane.xlu1 %629  ;;  %v628_v1 = vpop.xlane.xlu0 %627 }
 0x1a4   : > { %v806_v4 = vmul.f32 0.2, %v774_v3  ;;  %1520 = vrsqrt.f32 %v714_v46  ;;  %v680_v5 = vmul.f32 0.125, %v630_v48  ;;  %v679_v6 = vmul.f32 0.125, %v628_v1 }
 0x1a5   : > { %v1509_v35 = vpop.eup %1508  ;;  %v1289_v7 = vpack.c.bf16 %v848_v49, %v847_v0  ;;  %v805_v27 = vmul.f32 0.2, %v773_v2  ;;  %1522 = vrsqrt.f32 %v713_v61 }
 0x1a6   : > { %v1511_v34 = vpop.eup %1510  ;;  %v838_v20 = vmax.f32 %v774_v3, %v806_v4  ;;  %v790_v9 = vmul.f32 %v1509_v35, %v1834_v15  ;;  %v712_v10 = vadd.f32 1e-08, %v680_v5  ;;  %v711_v11 = vadd.f32 1e-08, %v679_v6 }
 0x1a7   : > { %1325 = vst [vmem:[%s1913_s21 + $0x50] sm:$0xff] %v1289_v7   ;;  %v837_v12 = vmax.f32 %v773_v2, %v805_v27  ;;  %v789_v8 = vmul.f32 %v1511_v34, %v1831_v14  ;;  %v662_v54 = vpop.xlane.xlu1 %661  ;;  %v660_v16 = vpop.xlane.xlu0 %659 }
 0x1a8   : > { %v822_v13 = vmul.f32 0.2, %v790_v9  ;;  %1524 = vrsqrt.f32 %v712_v10  ;;  %v696_v53 = vmul.f32 0.125, %v662_v54  ;;  %v695_v17 = vmul.f32 0.125, %v660_v16 }
 0x1a9   : > { %v1513_v18 = vpop.eup %1512  ;;  %v1264_v19 = vpack.c.bf16 %v838_v20, %v837_v12  ;;  %v821_v25 = vmul.f32 0.2, %v789_v8  ;;  %1526 = vrsqrt.f32 %v711_v11 }
 0x1aa   : > { %v1515_v26 = vpop.eup %1514  ;;  %v854_v28 = vmax.f32 %v790_v9, %v822_v13  ;;  %v772_v15 = vmul.f32 %v1513_v18, %v1844_v22  ;;  %v728_v23 = vadd.f32 1e-08, %v696_v53  ;;  %v727_v43 = vadd.f32 1e-08, %v695_v17 }
 0x1ab   : > { %1320 = vst [vmem:[%s1913_s21 + $0x28] sm:$0xff] %v1264_v19   ;;  %v853_v29 = vmax.f32 %v789_v8, %v821_v25  ;;  %v771_v14 = vmul.f32 %v1515_v26, %v1841_v21  ;;  %v666_v33 = vpop.xlane.xlu1 %665  ;;  %v664_v36 = vpop.xlane.xlu0 %663 }
 0x1ac   : > { %v804_v60 = vmul.f32 0.2, %v772_v15  ;;  %1528 = vrsqrt.f32 %v728_v23  ;;  %v698_v42 = vmul.f32 0.125, %v666_v33  ;;  %v697_v37 = vmul.f32 0.125, %v664_v36 }
 0x1ad   : > { %v1517_v38 = vpop.eup %1516  ;;  %v1304_v59 = vpack.c.bf16 %v854_v28, %v853_v29  ;;  %v803_v24 = vmul.f32 0.2, %v771_v14  ;;  %1530 = vrsqrt.f32 %v727_v43 }
 0x1ae   : > { %v1519_v41 = vpop.eup %1518  ;;  %v836_v44 = vmax.f32 %v772_v15, %v804_v60  ;;  %v788_v22 = vmul.f32 %v1517_v38, %v1854_v31  ;;  %v730_v32 = vadd.f32 1e-08, %v698_v42  ;;  %v729_v45 = vadd.f32 1e-08, %v697_v37 }
 0x1af   : > { %1328 = vst [vmem:[%s1913_s21 + $0x68] sm:$0xff] %v1304_v59   ;;  %v835_v21 = vmax.f32 %v771_v14, %v803_v24  ;;  %v787_v52 = vmul.f32 %v1519_v41, %v1851_v30 }
 0x1b0   : > { %v820_v55 = vmul.f32 0.2, %v788_v22  ;;  %1532 = vrsqrt.f32 %v730_v32 }
 0x1b1   : > { %v1521_v51 = vpop.eup %1520  ;;  %v1259_v58 = vpack.c.bf16 %v836_v44, %v835_v21  ;;  %v819_v49 = vmul.f32 0.2, %v787_v52  ;;  %1534 = vrsqrt.f32 %v729_v45 }
 0x1b2   : > { %v1523_v3 = vpop.eup %1522  ;;  %v852_v46 = vmax.f32 %v788_v22, %v820_v55  ;;  %v778_v61 = vmul.f32 %v1521_v51, %v1864_v40 }
 0x1b3   : > { %1319 = vst [vmem:[%s1913_s21 + $0x20] sm:$0xff] %v1259_v58   ;;  %v851_v0 = vmax.f32 %v787_v52, %v819_v49  ;;  %v777_v31 = vmul.f32 %v1523_v3, %v1861_v39 }
 0x1b4   : > { %v810_v2 = vmul.f32 0.2, %v778_v61 }
 0x1b5   : > { %v1525_v48 = vpop.eup %1524  ;;  %v1299_v1 = vpack.c.bf16 %v852_v46, %v851_v0  ;;  %v809_v30 = vmul.f32 0.2, %v777_v31 }
 0x1b6   : > { %v1527_v4 = vpop.eup %1526  ;;  %v842_v5 = vmax.f32 %v778_v61, %v810_v2  ;;  %v776_v6 = vmul.f32 %v1525_v48, %v1874_v50 }
 0x1b7   : > { %1327 = vst [vmem:[%s1913_s21 + $0x60] sm:$0xff] %v1299_v1   ;;  %v841_v35 = vmax.f32 %v777_v31, %v809_v30  ;;  %v775_v7 = vmul.f32 %v1527_v4, %v1871_v47 }
 0x1b8   : > { %v808_v27 = vmul.f32 0.2, %v776_v6 }
 0x1b9   : > { %v1529_v34 = vpop.eup %1528  ;;  %v1274_v40 = vpack.c.bf16 %v842_v5, %v841_v35  ;;  %v807_v20 = vmul.f32 0.2, %v775_v7 }
 0x1ba   : > { %v1531_v9 = vpop.eup %1530  ;;  %v840_v39 = vmax.f32 %v776_v6, %v808_v27  ;;  %v792_v10 = vmul.f32 %v1529_v34, %v1884_v57 }
 0x1bb   : > { %1322 = vst [vmem:[%s1913_s21 + $0x38] sm:$0xff] %v1274_v40   ;;  %v839_v11 = vmax.f32 %v775_v7, %v807_v20  ;;  %v791_v12 = vmul.f32 %v1531_v9, %v1881_v56 }
 0x1bc   : > { %v824_v50 = vmul.f32 0.2, %v792_v10 }
 0x1bd   : > { %v1533_v8 = vpop.eup %1532  ;;  %v1269_v54 = vpack.c.bf16 %v840_v39, %v839_v11  ;;  %v823_v47 = vmul.f32 0.2, %v791_v12 }
 0x1be   : > { %v1535_v16 = vpop.eup %1534  ;;  %v856_v13 = vmax.f32 %v792_v10, %v824_v50  ;;  %v794_v53 = vmul.f32 %v1533_v8, %v1894_v63 }
 0x1bf   : > { %1321 = vst [vmem:[%s1913_s21 + $0x30] sm:$0xff] %v1269_v54   ;;  %v855_v17 = vmax.f32 %v791_v12, %v823_v47  ;;  %v793_v57 = vmul.f32 %v1535_v16, %v1891_v62 }
 0x1c0   : > { %v826_v18 = vmul.f32 0.2, %v794_v53 }
 0x1c1   : > { %v1309_v19 = vpack.c.bf16 %v856_v13, %v855_v17  ;;  %v825_v25 = vmul.f32 0.2, %v793_v57 }
 0x1c2   : > { %v858_v56 = vmax.f32 %v794_v53, %v826_v18 }
 0x1c3   : > { %1329 = vst [vmem:[%s1913_s21 + $0x70] sm:$0xff] %v1309_v19   ;;  %v857_v26 = vmax.f32 %v793_v57, %v825_v25 }
 0x1c5   : > { %v1314_v62 = vpack.c.bf16 %v858_v56, %v857_v26 }
 0x1c7   : > { %1330 = vst [vmem:[%s1913_s21 + $0x78] sm:$0xff] %v1314_v62  }
 0x1c8   : > { %1549 = shalt.err (!%p1546_p5)
}
 0x1c9   : > { %s1550_s7 = scalar_lea.hbm %s1961_s29, 2048  ;;  %s1554_s10 = scalar_lea.hbm %s2016_s3, 4096 }
 0x1ca   : > { %p1551_p6 = scmp.ne.s32.totalorder %s1961_s29, %s1550_s7  ;;  %p1555_p10 = scmp.lt.s32.totalorder %s1961_s29, %s2016_s3 }
 0x1cb   : > { %p1556_p11 = scmp.lt.s32.totalorder %s1554_s10, %s1550_s7 }
 0x1cc   : > { %p1552_p7 = pnand %p1551_p6, %p1677_p4 }
 0x1cd   : > { %p1557_p12 = por %p1556_p11, %p1555_p10 }
 0x1ce   : > { %p1553_p9 = pneg %p1552_p7 }
 0x1d0   : > { %p1558_p13 = pnand %p1557_p12, %p1553_p9 }
 0x1d2   : > { %1561 = shalt.err (!%p1558_p13)
}
 0x1d3   : > { %s1615_s19 = smov 64   ;;  %s1616_s21 = smov 4  }
 0x1d4   : > { %1396 = dma.vmem_to_hbm [thread:$0]  (%p1677_p4), %s1963_s26, 2048, %s1961_s29, %s1968_s30, %s1615_s19, %s1615_s19, %s1616_s21  }
 0x1d5 PF: > { %p1402_p0 = scmp.ge.s32.totalorder %s1612_s17, 2  ;;  %s1048_s23 = sand.u32 1, %s1592_s12  }
 0x1d6   : > { %s1049_s27 = scalar_lea.sflag [#allocation4], %s1048_s23 }
 0x1d7   : > { %p1399_p1 = pnand %p1402_p0, %p1684_p8 }
 0x1d9   : > { %p1400_p2 = pneg %p1399_p1 }
 0x1db   : > { %1587 = dma.done.wait (%p1400_p2), %s1049_s27, 2048  }
 0x1dc   : > { %1589 = vsyncadd (%p1400_p2), %s1049_s27, 4294965248  ;;  %s16_s17 = sadd.s32 1, %s1612_s17   ;;  %s2019_s12 = smov %s1596_s13 }
 0x1dd   : > { %p13_p3 = scmp.ge.s32.totalorder %s16_s17, 4   ;;  %s2020_s13 = smov %s1600_s14 }
 0x1de   : > { %s2021_s14 = smov %s1690_s25  ;;  %s2022_s15 = smov %s1608_s16 }
 0x1df   : > { %s2023_s16 = smov %s2025_s20  ;;  %15 = sbr.rel (!%p13_p3) target bundleno = 4 (0x4), region = 70 }
 0x1e4   :  { %1054 = vsyncpa [#allocation4], 1 }
 0x1e5   :  { %1056 = vsyncpa [#allocation4 + $0x1], 1 }

</bundles_post_ra>
